<compile_context>
chip_gen: v5e
topology: v5e:2x2
jax: 0.10.0
libtpu: 0.0.40
codegen_flags: <defaults>
</compile_context>

<pallas_src>
import functools

import jax
import jax.numpy as jnp
from jax.experimental import pallas as pl
from jax.experimental.pallas import tpu as pltpu


# ----------------------------------------------------------------------------
# Kernel
# ----------------------------------------------------------------------------
def _ffn_kernel(x_ref, w1_ref, w2_ref, w3_ref, o_ref, acc_ref):
    # x_ref:   (tm, E)      current row tile
    # w1_ref:  (E, th)      gate-projection hidden panel k
    # w2_ref:  (E, th)      up-projection hidden panel k
    # w3_ref:  (th, E)      down-projection hidden panel k
    # o_ref:   (tm, E)      output tile (resident across k)
    # acc_ref: (tm, E) f32  accumulator scratch
    k = pl.program_id(1)
    n_k = pl.num_programs(1)

    @pl.when(k == 0)
    def _():
        acc_ref[...] = jnp.zeros_like(acc_ref)

    x = x_ref[...]

    # Gate / up projections on the MXU with f32 accumulation.
    h1 = jnp.dot(x, w1_ref[...], preferred_element_type=jnp.float32)
    h2 = jnp.dot(x, w2_ref[...], preferred_element_type=jnp.float32)

    # SwiGLU: silu(h1) * h2 (VPU + EUP elementwise, f32).
    gated = (h1 * jax.nn.sigmoid(h1)) * h2

    # Down projection for this hidden panel (cast to weight dtype — intentional).
    contrib = jnp.dot(gated.astype(w3_ref.dtype), w3_ref[...],
                      preferred_element_type=jnp.float32)

    @pl.when(k < n_k - 1)
    def _():
        acc_ref[...] += contrib

    @pl.when(k == n_k - 1)
    def _():
        # Fold the last panel straight into the output tile: saves one full
        # (tm, E) f32 accumulator write + re-read per row tile and relieves
        # the single-issue vst slot on v5e.
        o_ref[...] = (acc_ref[...] + contrib).astype(o_ref.dtype)


# ----------------------------------------------------------------------------
# Generation-aware tile selection
# ----------------------------------------------------------------------------
def _round_up(x, m):
    return ((x + m - 1) // m) * m


def _vmem_capacity_bytes():
    try:
        cap = int(pltpu.get_tpu_info().vmem_capacity_bytes)
        if cap > 0:
            return cap
    except Exception:
        pass
    return 64 << 20  # conservative fallback: assume v7x-sized VMEM


def _hidden_panels(H, th_max=1024):
    """Descending list of multiple-of-128 divisors of H (<= th_max), else [H]."""
    panels = []
    t = (min(H, th_max) // 128) * 128
    while t >= 128:
        if H % t == 0:
            panels.append(t)
        t -= 128
    if not panels:
        # TODO(synk): awkward H with no 128-aligned divisor keeps the whole
        # hidden dim resident per tile; pad H to a 128 multiple for such configs.
        panels = [H]
    return panels


def _tile_footprint_bytes(tm, th, E, item_x, item_w):
    """Double-buffered block DMA buffers + f32 accumulator + f32 intermediates."""
    dbl = 2 * (tm * E * item_x            # x tiles
               + 2 * E * th * item_w      # W1 + W2 panels
               + th * E * item_w          # W3 panels
               + tm * E * item_x)         # out tiles
    acc = tm * E * 4                      # accumulator scratch
    inter = 4 * tm * th * 4               # h1, h2, gated (+ cast copy), f32
    return dbl + acc + inter


def _pick_tiles(M, E, H, item_x, item_w, capacity):
    budget = int(0.90 * capacity)
    sub = max(8, 32 // item_x)            # sublane packing: 8 f32 / 16 bf16 / 32 int8
    tm_cap = _round_up(M, sub)
    panels = _hidden_panels(H)
    # Prefer the largest row tile first (cuts weight re-streaming per FLOP),
    # then the largest hidden panel that still fits the chip's VMEM.
    for tm_c in (512, 256, 128, 64, 32, 16, 8):
        tm = min(tm_c, tm_cap)
        tm = max(sub, (tm // sub) * sub)
        for th in panels:
            if _tile_footprint_bytes(tm, th, E, item_x, item_w) <= budget:
                return tm, th
    return max(sub, min(tm_cap, sub)), panels[-1]


# ----------------------------------------------------------------------------
# Wrapper
# ----------------------------------------------------------------------------
@functools.partial(jax.jit, static_argnames=("tm", "th", "vmem_limit"))
def _feed_forward_impl(x, w1, w2, w3, *, tm, th, vmem_limit):
    B, T, E = x.shape
    H = w1.shape[1]
    M = B * T
    x2 = x.reshape(M, E)

    n_k = H // th

    # Pad rows so the grid divides evenly (padded rows give silu(0)*0 = 0).
    M_pad = pl.cdiv(M, tm) * tm
    if M_pad != M:
        x2 = jnp.pad(x2, ((0, M_pad - M), (0, 0)))

    grid = (M_pad // tm, n_k)

    # TODO(synk): for v7x decode shapes with only 1-2 row tiles, split the k
    # axis across the two TensorCores (per-core partial accumulators + a final
    # cross-core add) so the second core is not idle.
    # Note: if a profile still shows exposed weight DMA on 128-MiB parts, add
    # pipeline_mode=pl.Buffered(3) to the W1/W2/W3 BlockSpecs (not on v7x).
    out = pl.pallas_call(
        _ffn_kernel,
        out_shape=jax.ShapeDtypeStruct((M_pad, E), x.dtype),
        grid_spec=pltpu.PrefetchScalarGridSpec(
            num_scalar_prefetch=0,
            grid=grid,
            in_specs=[
                pl.BlockSpec((tm, E), lambda i, k: (i, 0)),   # x row tile
                pl.BlockSpec((E, th), lambda i, k: (0, k)),   # W1 hidden panel
                pl.BlockSpec((E, th), lambda i, k: (0, k)),   # W2 hidden panel
                pl.BlockSpec((th, E), lambda i, k: (k, 0)),   # W3 hidden panel
            ],
            out_specs=pl.BlockSpec((tm, E), lambda i, k: (i, 0)),
            scratch_shapes=[pltpu.VMEM((tm, E), jnp.float32)],
        ),
        compiler_params=pltpu.CompilerParams(
            dimension_semantics=("parallel", "arbitrary"),
            vmem_limit_bytes=int(vmem_limit),
        ),
    )(x2, w1, w2, w3)

    if M_pad != M:
        out = out[:M]
    return out.reshape(B, T, E)


def feed_forward(x, w1, w2, w3):
    """x: (B, T, E); w1/w2: (E, H); w3: (H, E). Returns (B, T, E).

    Weights are stored (in_features, out_features) = transpose of
    torch.nn.Linear.weight, so the kernel computes plain `x @ W`.
    """
    B, T, E = x.shape
    H = w1.shape[1]
    M = B * T
    item_x = x.dtype.itemsize
    item_w = w1.dtype.itemsize

    capacity = _vmem_capacity_bytes()
    tm, th = _pick_tiles(M, E, H, item_x, item_w, capacity)

    vmem_needed = _tile_footprint_bytes(tm, th, E, item_x, item_w)
    # Clamp to ~90% of physical VMEM (not a hard 128 MiB) so v7x's 64 MiB parts
    # never get over-subscribed; keep a 16 MiB floor above scoped defaults.
    vmem_limit = min(max(vmem_needed + (4 << 20), 16 << 20),
                     int(0.92 * capacity))

    return _feed_forward_impl(x, w1, w2, w3, tm=tm, th=th,
                              vmem_limit=int(vmem_limit))


def feed_forward_ref(x, w1, w2, w3):
    h1 = x @ w1
    h2 = x @ w2
    return (jax.nn.silu(h1) * h2) @ w3


if __name__ == "__main__":
    # Small config consistent with the module's forward.
    cfg = dict(emb_dim=32, hidden_dim=64, dtype=jnp.float32)
    B, T = 2, 8

    key = jax.random.PRNGKey(0)
    kx, k1, k2, k3 = jax.random.split(key, 4)

    x = jax.random.normal(kx, (B, T, cfg["emb_dim"]), dtype=cfg["dtype"])
    # Deterministic weights, stored as (in_features, out_features).
    w1 = (jax.random.normal(k1, (cfg["emb_dim"], cfg["hidden_dim"]),
                            dtype=cfg["dtype"]) * 0.05)
    w2 = (jax.random.normal(k2, (cfg["emb_dim"], cfg["hidden_dim"]),
                            dtype=cfg["dtype"]) * 0.05)
    w3 = (jax.random.normal(k3, (cfg["hidden_dim"], cfg["emb_dim"]),
                            dtype=cfg["dtype"]) * 0.05)

    out = feed_forward(x, w1, w2, w3)
    out = jax.block_until_ready(out)

    ref = feed_forward_ref(x, w1, w2, w3)
    assert out.shape == (B, T, cfg["emb_dim"])
    assert jnp.allclose(out, ref, atol=1e-4, rtol=1e-4)

    print("KERNEL_OK")
</pallas_src>

<mosaic_0001>
module attributes {stable_mosaic.version = 11 : i64} {
  func.func @_ffn_kernel(%arg0: i32, %arg1: i32, %arg2: memref<16x32xf32, #tpu.memory_space<vmem>>, %arg3: memref<32x64xf32, #tpu.memory_space<vmem>>, %arg4: memref<32x64xf32, #tpu.memory_space<vmem>>, %arg5: memref<64x32xf32, #tpu.memory_space<vmem>>, %arg6: memref<16x32xf32, #tpu.memory_space<vmem>>, %arg7: memref<16x32xf32, #tpu.memory_space<vmem>>) attributes {dimension_semantics = [#tpu.dimension_semantics<parallel>, #tpu.dimension_semantics<arbitrary>], iteration_bounds = array<i64: 1, 1>, scalar_prefetch = 0 : i64, scratch_operands = 1 : i64, tpu.core_type = #tpu.core_type<tc>, window_params = [{transform_indices = @transform_0, window_bounds = array<i64: 16, 32>}, {transform_indices = @transform_1, window_bounds = array<i64: 32, 64>}, {transform_indices = @transform_2, window_bounds = array<i64: 32, 64>}, {transform_indices = @transform_3, window_bounds = array<i64: 64, 32>}, {transform_indices = @transform_4, window_bounds = array<i64: 16, 32>}]} {
    %c0_i32 = arith.constant 0 : i32
    %0 = arith.cmpi eq, %arg1, %c0_i32 : i32
    %1 = arith.extui %0 : i1 to i32
    %c0_i32_0 = arith.constant 0 : i32
    %2 = arith.cmpi ne, %1, %c0_i32_0 : i32
    scf.if %2 {
      %cst_15 = arith.constant 0.000000e+00 : f32
      %23 = vector.broadcast %cst_15 : f32 to vector<16x32xf32>
      %c0_16 = arith.constant 0 : index
      %c0_17 = arith.constant 0 : index
      %24 = vector.load %arg7[%c0_16, %c0_17] : memref<16x32xf32, #tpu.memory_space<vmem>>, vector<16x32xf32>
      tpu.vector_store %arg7[%c0_16, %c0_17], %23 {strides = array<i32>} : memref<16x32xf32, #tpu.memory_space<vmem>>, vector<16x32xf32>,
    } else {
    }
    %c0 = arith.constant 0 : index
    %c0_1 = arith.constant 0 : index
    %3 = vector.load %arg2[%c0, %c0_1] : memref<16x32xf32, #tpu.memory_space<vmem>>, vector<16x32xf32>
    %c0_2 = arith.constant 0 : index
    %c0_3 = arith.constant 0 : index
    %4 = vector.load %arg3[%c0_2, %c0_3] : memref<32x64xf32, #tpu.memory_space<vmem>>, vector<32x64xf32>
    %cst = arith.constant dense<0.000000e+00> : vector<16x64xf32>
    %5 = tpu.matmul %3, %4, %cst {dimension_numbers = #tpu.dot_dimension_numbers<[1], [0], [0], [1], [0, 0, 1, 1], [], []>} : vector<16x32xf32>, vector<32x64xf32>, vector<16x64xf32> -> vector<16x64xf32>
    %c0_4 = arith.constant 0 : index
    %c0_5 = arith.constant 0 : index
    %6 = vector.load %arg4[%c0_4, %c0_5] : memref<32x64xf32, #tpu.memory_space<vmem>>, vector<32x64xf32>
    %cst_6 = arith.constant dense<0.000000e+00> : vector<16x64xf32>
    %7 = tpu.matmul %3, %6, %cst_6 {dimension_numbers = #tpu.dot_dimension_numbers<[1], [0], [0], [1], [0, 0, 1, 1], [], []>} : vector<16x32xf32>, vector<32x64xf32>, vector<16x64xf32> -> vector<16x64xf32>
    %8 = arith.negf %5 : vector<16x64xf32>
    %9 = math.exp %8 : vector<16x64xf32>
    %cst_7 = arith.constant 1.000000e+00 : f32
    %10 = vector.broadcast %cst_7 : f32 to vector<16x64xf32>
    %11 = arith.addf %10, %9 : vector<16x64xf32>
    %12 = arith.divf %10, %11 : vector<16x64xf32>
    %13 = arith.mulf %5, %12 : vector<16x64xf32>
    %14 = arith.mulf %13, %7 : vector<16x64xf32>
    %c0_8 = arith.constant 0 : index
    %c0_9 = arith.constant 0 : index
    %15 = vector.load %arg5[%c0_8, %c0_9] : memref<64x32xf32, #tpu.memory_space<vmem>>, vector<64x32xf32>
    %cst_10 = arith.constant dense<0.000000e+00> : vector<16x32xf32>
    %16 = tpu.matmul %14, %15, %cst_10 {dimension_numbers = #tpu.dot_dimension_numbers<[1], [0], [0], [1], [0, 0, 1, 1], [], []>} : vector<16x64xf32>, vector<64x32xf32>, vector<16x32xf32> -> vector<16x32xf32>
    %c0_i32_11 = arith.constant 0 : i32
    %17 = arith.cmpi slt, %arg1, %c0_i32_11 : i32
    %18 = arith.extui %17 : i1 to i32
    %c0_i32_12 = arith.constant 0 : i32
    %19 = arith.cmpi ne, %18, %c0_i32_12 : i32
    scf.if %19 {
      %c0_15 = arith.constant 0 : index
      %c0_16 = arith.constant 0 : index
      %23 = vector.load %arg7[%c0_15, %c0_16] : memref<16x32xf32, #tpu.memory_space<vmem>>, vector<16x32xf32>
      %24 = arith.addf %23, %16 : vector<16x32xf32>
      %c0_17 = arith.constant 0 : index
      %c0_18 = arith.constant 0 : index
      %25 = vector.load %arg7[%c0_17, %c0_18] : memref<16x32xf32, #tpu.memory_space<vmem>>, vector<16x32xf32>
      tpu.vector_store %arg7[%c0_17, %c0_18], %24 {strides = array<i32>} : memref<16x32xf32, #tpu.memory_space<vmem>>, vector<16x32xf32>,
    } else {
    }
    %c0_i32_13 = arith.constant 0 : i32
    %20 = arith.cmpi eq, %arg1, %c0_i32_13 : i32
    %21 = arith.extui %20 : i1 to i32
    %c0_i32_14 = arith.constant 0 : i32
    %22 = arith.cmpi ne, %21, %c0_i32_14 : i32
    scf.if %22 {
      %c0_15 = arith.constant 0 : index
      %c0_16 = arith.constant 0 : index
      %23 = vector.load %arg7[%c0_15, %c0_16] : memref<16x32xf32, #tpu.memory_space<vmem>>, vector<16x32xf32>
      %24 = arith.addf %23, %16 : vector<16x32xf32>
      %c0_17 = arith.constant 0 : index
      %c0_18 = arith.constant 0 : index
      %25 = vector.load %arg6[%c0_17, %c0_18] : memref<16x32xf32, #tpu.memory_space<vmem>>, vector<16x32xf32>
      tpu.vector_store %arg6[%c0_17, %c0_18], %24 {strides = array<i32>} : memref<16x32xf32, #tpu.memory_space<vmem>>, vector<16x32xf32>,
    } else {
    }
    return
  }
  func.func @transform_0(%arg0: i32, %arg1: i32) -> (i32, i32) {
    %c0_i32 = arith.constant 0 : i32
    %c0_i32_0 = arith.constant 0 : i32
    return %arg0, %c0_i32 : i32, i32
  }
  func.func @transform_1(%arg0: i32, %arg1: i32) -> (i32, i32) {
    %c0_i32 = arith.constant 0 : i32
    %c0_i32_0 = arith.constant 0 : i32
    return %c0_i32, %arg1 : i32, i32
  }
  func.func @transform_2(%arg0: i32, %arg1: i32) -> (i32, i32) {
    %c0_i32 = arith.constant 0 : i32
    %c0_i32_0 = arith.constant 0 : i32
    return %c0_i32, %arg1 : i32, i32
  }
  func.func @transform_3(%arg0: i32, %arg1: i32) -> (i32, i32) {
    %c0_i32 = arith.constant 0 : i32
    %c0_i32_0 = arith.constant 0 : i32
    return %arg1, %c0_i32 : i32, i32
  }
  func.func @transform_4(%arg0: i32, %arg1: i32) -> (i32, i32) {
    %c0_i32 = arith.constant 0 : i32
    %c0_i32_0 = arith.constant 0 : i32
    return %arg0, %c0_i32 : i32, i32
  }
}

</mosaic_0001>

<bundles_post_ra>
// kernel: _feed_forward_impl.1
= control target key start
LH: loop header
LB: loop body
LE: loop exit
PB: predicated region body
PF: predicated region fallthrough
CT: control target
= control target key end

     0   :  { %vm22_vm0 = vcmask 261120   ;;  %v259_v2 = vmov 0.0   ;;  %s355_s0 = inlined_call_operand.vmem [shape: f32[16,32], index: 0, kind: input, shape index: {}]   ;;  %s356_s1 = inlined_call_operand.vmem [shape: f32[32,64], index: 1, kind: input, shape index: {}]   ;;  %s357_s2 = inlined_call_operand.vmem [shape: f32[32,64], index: 2, kind: input, shape index: {}]   ;;  %s358_s3 = inlined_call_operand.vmem [shape: f32[64,32], index: 3, kind: input, shape index: {}]   ;;  %s359_s4 = inlined_call_operand.hbm [shape: f32[16,32], index: 4, kind: output, shape index: {}]  }
   0x1   :  { %v30_v0 = vld [vmem:[%s356_s1 + $0x18] sm:$0xff]  ;;  %v29_v1 = vld [vmem:[%s356_s1 + $0x10] sm:$0xff]  ;;  %23 = vst.msk [vmem:[#allocation2] sm:$0xff] %vm22_vm0, %v259_v2  ;;  %v28_v3 = vld [vmem:[%s356_s1 + $0x8] sm:$0xff] }
   0x2   :  { %50 = vmatpush.msra.mxu0 %v30_v0  ;;  %24 = vst.msk [vmem:[#allocation2 + $0x8] sm:$0xff] %vm22_vm0, %v259_v2  ;;  %v64_v4 = vld [vmem:[%s357_s2 + $0x18] sm:$0xff]  ;;  %v63_v5 = vld [vmem:[%s357_s2 + $0x10] sm:$0xff] }
   0x3   :  { %77 = vmatpush.msra.mxu1 %v64_v4 }
   0x4   :  { %51 = vmatpush.msra.mxu0 %v29_v1 }
   0x5   :  { %9 = vsyncpa [#allocation4], 0  ;;  %v27_v6 = vld [vmem:[%s356_s1] sm:$0xff]  ;;  %v62_v7 = vld [vmem:[%s357_s2 + $0x8] sm:$0xff]  ;;  %78 = vmatpush.msra.mxu1 %v63_v5  ;;  %vm138_vm5 = vcmask 523264   ;;  %s193_s25 = sshll.u32 %s359_s4, 4  ;;  %s194_s25 = int_to_ptr.hbm [resolvable:$true] %s193_s25 }
   0x6   :  { %52 = vmatpush.msra.mxu0 %v28_v3  ;;  %v25_v8 = vld [vmem:[%s355_s0] sm:$0xff]  ;;  %v26_v10 = vld [vmem:[%s355_s0 + $0x8] sm:$0xff]  ;;  %v137_v11 = vld [vmem:[%s358_s3 + $0x38] sm:$0xff]  ;;  %s261_s26 = smov 128   ;;  %s262_s27 = smov 8  }
   0x7   :  { %v61_v9 = vld [vmem:[%s357_s2] sm:$0xff]  ;;  %79 = vmatpush.msra.mxu1 %v62_v7  ;;  %153 = vmatpush.msra.mxu2 %v137_v11  ;;  %v136_v12 = vld [vmem:[%s358_s3 + $0x30] sm:$0xff]  ;;  %v135_v13 = vld [vmem:[%s358_s3 + $0x28] sm:$0xff] }
   0x8   :  { %53 = vmatpush.msra.mxu0 %v27_v6  ;;  %213 = vmatpush.msra.mxu3 %v137_v11  ;;  %v134_v14 = vld [vmem:[%s358_s3 + $0x20] sm:$0xff]  ;;  %v133_v15 = vld [vmem:[%s358_s3 + $0x18] sm:$0xff]  ;;  %v132_v16 = vld [vmem:[%s358_s3 + $0x10] sm:$0xff] }
   0x9   :  { %205 = vmatmul.msk.f32.vlgmr.msra.gmra.mxu0 %vm22_vm0, %v25_v8  ;;  %80 = vmatpush.msra.mxu1 %v61_v9  ;;  %v131_v17 = vld [vmem:[%s358_s3 + $0x8] sm:$0xff]  ;;  %v130_v18 = vld [vmem:[%s358_s3] sm:$0xff]  ;;  %s260_s3 = smov [#allocation3]  }
   0xa   :  { %207 = vmatmul.msk.f32.vlgmr.msra.gmra.mxu1 %vm22_vm0, %v25_v8  ;;  %154 = vmatpush.msra.mxu2 %v136_v12  ;;  %v181_v53 = vld [vmem:[#allocation2] sm:$0xff]  ;;  %s191_s22 = sshll.u32 %s260_s3, 4  ;;  %v182_v56 = vld [vmem:[#allocation2 + $0x8] sm:$0xff]  ;;  %s192_s22 = int_to_ptr.vmem [resolvable:$true] %s191_s22 }
   0xb   :  { %214 = vmatpush.msra.mxu3 %v136_v12 }
   0xc   :  { %155 = vmatpush.msra.mxu2 %v135_v13 }
   0xd   :  { %215 = vmatpush.msra.mxu3 %v135_v13 }
   0xe   :  { %156 = vmatpush.msra.mxu2 %v134_v14 }
   0xf   :  { %216 = vmatpush.msra.mxu3 %v134_v14 }
  0x10   :  { %157 = vmatpush.msra.mxu2 %v133_v15 }
  0x11   :  { %206 = vmatmul.msk.f32.gmra.mxu0 %vm22_vm0, %v26_v10  ;;  %217 = vmatpush.msra.mxu3 %v133_v15 }
  0x12   :  { %208 = vmatmul.msk.f32.gmra.mxu1 %vm22_vm0, %v26_v10  ;;  %158 = vmatpush.msra.mxu2 %v132_v16 }
  0x13   :  { %218 = vmatpush.msra.mxu3 %v132_v16 }
  0x14   :  { %159 = vmatpush.msra.mxu2 %v131_v17 }
  0x15   :  { %219 = vmatpush.msra.mxu3 %v131_v17 }
  0x16   :  { %160 = vmatpush.msra.mxu2 %v130_v18 }
  0x17   :  { %220 = vmatpush.msra.mxu3 %v130_v18 }
  0x86   :  { %v55_v19 = vpop.f32.mrf.mxu0 }
  0x87   :  { %v209_v20 = vmul.f32 -1.442695, %v55_v19  ;;  %v82_v36 = vpop.f32.mrf.mxu1 }
  0x89   :  { %225 = vpow2.f32 %v209_v20 }
  0x8e   :  { %v58_v21 = vpop.f32.mrf.mxu0 }
  0x8f   :  { %v226_v22 = vpop.eup %225  ;;  %v210_v23 = vmul.f32 -1.442695, %v58_v21  ;;  %v85_v50 = vpop.f32.mrf.mxu1 }
  0x90   :  { %v94_v24 = vadd.f32 1.0, %v226_v22 }
  0x91   :  { %227 = vpow2.f32 %v210_v23 }
  0x92   :  { %229 = vrcp.f32 %v94_v24  ;;  %v107_v30 = vand.u32 2147483648, %v94_v24  ;;  %v105_v32 = vand.u32 2147483647, %v94_v24  ;;  %vm101_vm2 = vweird.f32 %v94_v24 }
  0x94   :  { %v108_v35 = vor.u32 1.1754944e-38, %v107_v30  ;;  %vm106_vm4 = vcmp.eq.f32.partialorder %v105_v32, 8.507059e+37 }
  0x97   :  { %v228_v25 = vpop.eup %227 }
  0x98   :  { %v230_v26 = vpop.eup %229  ;;  %v95_v27 = vadd.f32 1.0, %v228_v25 }
  0x99   :  { %v97_v28 = vmul.f32 %v230_v26, %v94_v24  ;;  %vm102_vm1 = vweird.f32 %v230_v26 }
  0x9a   :  { %231 = vrcp.f32 %v95_v27  ;;  %vm103_vm3 = vmor %vm101_vm2, %vm102_vm1  ;;  %v122_v42 = vand.u32 2147483648, %v95_v27  ;;  %v120_v44 = vand.u32 2147483647, %v95_v27  ;;  %vm116_vm7 = vweird.f32 %v95_v27 }
  0x9b   :  { %v98_v29 = vsub.f32 1.0, %v97_v28 }
  0x9c   :  { %v123_v47 = vor.u32 1.1754944e-38, %v122_v42  ;;  %vm121_vm9 = vcmp.eq.f32.partialorder %v120_v44, 8.507059e+37 }
  0x9d   :  { %v99_v31 = vmul.f32 %v230_v26, %v98_v29 }
  0x9f   :  { %v100_v33 = vadd.f32 %v230_v26, %v99_v31 }
  0xa0   :  { %v232_v34 = vpop.eup %231 }
  0xa1   :  { %v104_v37 = vsel %vm103_vm3, %v230_v26, %v100_v33  ;;  %v112_v38 = vmul.f32 %v232_v34, %v95_v27  ;;  %vm117_vm6 = vweird.f32 %v232_v34 }
  0xa2   :  { %v109_v39 = vsel %vm106_vm4, %v108_v35, %v104_v37  ;;  %vm118_vm8 = vmor %vm116_vm7, %vm117_vm6 }
  0xa3   :  { %v126_v40 = vmul.f32 %v109_v39, %v55_v19  ;;  %v113_v41 = vsub.f32 1.0, %v112_v38 }
  0xa5   :  { %v114_v43 = vmul.f32 %v232_v34, %v113_v41  ;;  %v128_v45 = vmul.f32 %v126_v40, %v82_v36 }
  0xa7   :  { %v115_v46 = vadd.f32 %v232_v34, %v114_v43  ;;  %211 = vmatmul.msk.f32.vlgmr.msra.gmra.mxu2 %vm138_vm5, %v128_v45 }
  0xa9   :  { %v119_v48 = vsel %vm118_vm8, %v232_v34, %v115_v46 }
  0xaa   :  { %v124_v49 = vsel %vm121_vm9, %v123_v47, %v119_v48 }
  0xab   :  { %v127_v51 = vmul.f32 %v124_v49, %v58_v21 }
  0xad   :  { %v129_v52 = vmul.f32 %v127_v51, %v85_v50 }
  0xaf   :  { %212 = vmatmul.msk.f32.vlgmr.msra.gmra.mxu3 %vm138_vm5, %v129_v52 }
 0x12a   :  { %v162_v54 = vpop.f32.mrf.mxu2 }
 0x12b   :  { %v183_v55 = vadd.f32 %v181_v53, %v162_v54 }
 0x12d   :  { %185 = vst.msk [vmem:[#allocation3] sm:$0xff] %vm22_vm0, %v183_v55 }
 0x132   :  { %v165_v57 = vpop.f32.mrf.mxu3 }
 0x133   :  { %v184_v58 = vadd.f32 %v182_v56, %v165_v57 }
 0x135   :  { %186 = vst.msk [vmem:[#allocation3 + $0x8] sm:$0xff] %vm22_vm0, %v184_v58 }
 0x136   :  { %199 = dma.vmem_to_hbm [thread:$0]  %s192_s22, 256, %s194_s25, [#allocation4], %s261_s26, %s261_s26, %s262_s27  }
 0x137   :  { %257 = dma.done.wait [#allocation4], 256  }
 0x138   :  { %258 = vsyncadd [#allocation4], 4294967040 }
 0x139   :  { %204 = vsyncpa [#allocation4], 1 }

</bundles_post_ra>
